<compile_context>
chip_gen: v6e
topology: v6e:2x2x1
jax: 0.10.0
libtpu: 0.0.40
codegen_flags: <defaults>
</compile_context>

<pallas_src>
import math

import jax
import jax.numpy as jnp
from jax.experimental import pallas as pl
from jax.experimental.pallas import tpu as pltpu


# --------------------------------------------------------------------------- #
# Kernels
# --------------------------------------------------------------------------- #
def _make_kd_kernel(nco, has_mask):
    """Build the per-tile accumulation kernel (nco / has_mask are compile-time)."""
    if has_mask:

        def kernel(out_ref, tgt_ref, tnew_ref, acc_to_ref, acc_cnt_ref):
            # out_ref / tgt_ref : (1, C, T)   native dtype (e.g. bf16 or f32)
            # tnew_ref          : (1, 1, T)   int labels
            # acc_to_ref        : (1, C, T)   f32 running sum of keep * targets * outputs
            # acc_cnt_ref       : (1, 1, T)   f32 running count of masked-out pixels
            step = pl.program_id(1)

            @pl.when(step == 0)
            def _():
                acc_to_ref[...] = jnp.zeros_like(acc_to_ref)
                acc_cnt_ref[...] = jnp.zeros_like(acc_cnt_ref)

            o = out_ref[...].astype(jnp.float32)          # (1, C, T)
            t = tgt_ref[...].astype(jnp.float32)          # (1, C, T)
            tn = tnew_ref[...]                            # (1, 1, T)

            drop = jnp.logical_and(tn != 255, tn >= nco)  # new-class pixels -> masked out
            keep = jnp.where(drop, 0.0, 1.0).astype(jnp.float32)   # (1, 1, T)

            acc_to_ref[...] += (t * keep) * o             # lane-parallel partial sums
            acc_cnt_ref[...] += 1.0 - keep                # masked-out pixel counts

        return kernel

    def kernel(out_ref, tgt_ref, acc_to_ref):
        step = pl.program_id(1)

        @pl.when(step == 0)
        def _():
            acc_to_ref[...] = jnp.zeros_like(acc_to_ref)

        o = out_ref[...].astype(jnp.float32)
        t = tgt_ref[...].astype(jnp.float32)
        acc_to_ref[...] += t * o

    return kernel


# --------------------------------------------------------------------------- #
# Tiling helper
# --------------------------------------------------------------------------- #
def _pick_lane_tile(hw, max_lanes):
    """Largest multiple-of-128 divisor of hw that is <= max_lanes (or hw itself)."""
    if hw % 128 != 0:
        return hw                     # full-extent block (allowed by layout rules)
    cap = min(hw, max_lanes)
    cap -= cap % 128
    cap = max(cap, 128)
    t = cap
    while hw % t != 0:
        t -= 128
    return t


# --------------------------------------------------------------------------- #
# Wrapper
# --------------------------------------------------------------------------- #
def kd_ce_loss_with_background(outputs, targets, targets_new=None, nco=None,
                               *, temp=1, weight=None, max_lanes=8192):
    """JAX/Pallas equivalent of KnowledgeDistillationCELossUmbertoOldWithBackground.

    outputs, targets : (N, C, *spatial), same shape (soft distributions / log-probs).
    targets_new      : optional (N, *spatial) integer label map (255 = ignore).
    nco              : number of old classes (int > 0).
    """
    if weight is not None:
        # TODO(synk): the PyTorch weighted branch's denom uses `loss.dim()` after loss
        # became a 0-dim scalar (shape-dependent broadcasting); not reproduced here.
        raise NotImplementedError("weight is not None path is not supported")
    assert outputs.shape == targets.shape, "outputs and targets must have equal shapes"
    assert isinstance(nco, int) and nco > 0, "nco must be a positive int"
    assert isinstance(temp, int), "temp must be an int"

    N, C = int(outputs.shape[0]), int(outputs.shape[1])
    spatial = outputs.shape[2:]
    HW = int(math.prod(spatial)) if len(spatial) > 0 else 1

    out_flat = outputs.reshape(N, C, HW)          # native dtype, no up-cast
    tgt_flat = targets.reshape(N, C, HW)          # native dtype, no up-cast

    thw = _pick_lane_tile(HW, max_lanes)
    grid = (N, HW // thw)

    has_mask = targets_new is not None
    kernel = _make_kd_kernel(int(nco), has_mask)

    in_specs = [
        pl.BlockSpec((1, C, thw), lambda n, i: (n, 0, i)),
        pl.BlockSpec((1, C, thw), lambda n, i: (n, 0, i)),
    ]
    out_shapes = [jax.ShapeDtypeStruct((N, C, thw), jnp.float32)]
    out_specs = [pl.BlockSpec((1, C, thw), lambda n, i: (n, 0, 0))]
    args = [out_flat, tgt_flat]

    if has_mask:
        assert targets_new.shape == (N,) + tuple(spatial), "targets_new shape mismatch"
        tnew_flat = targets_new.reshape(N, 1, HW)
        if not jnp.issubdtype(tnew_flat.dtype, jnp.integer):
            tnew_flat = tnew_flat.astype(jnp.int32)
        in_specs.append(pl.BlockSpec((1, 1, thw), lambda n, i: (n, 0, i)))
        out_shapes.append(jax.ShapeDtypeStruct((N, 1, thw), jnp.float32))
        out_specs.append(pl.BlockSpec((1, 1, thw), lambda n, i: (n, 0, 0)))
        args.append(tnew_flat)

    bytes_accessed = (out_flat.size * out_flat.dtype.itemsize
                      + tgt_flat.size * tgt_flat.dtype.itemsize)
    if has_mask:
        bytes_accessed += args[2].size * args[2].dtype.itemsize
    bytes_accessed += sum(int(math.prod(s.shape)) * 4 for s in out_shapes)

    cost = pl.CostEstimate(flops=3 * N * C * HW,
                           transcendentals=0,
                           bytes_accessed=int(bytes_accessed))

    multi_out = len(out_shapes) > 1
    results = pl.pallas_call(
        kernel,
        out_shape=tuple(out_shapes) if multi_out else out_shapes[0],
        grid=grid,
        in_specs=in_specs,
        out_specs=tuple(out_specs) if multi_out else out_specs[0],
        compiler_params=pltpu.CompilerParams(
            dimension_semantics=("parallel", "arbitrary")),
        cost_estimate=cost,
    )(*args)

    if has_mask:
        acc_to, acc_cnt = results
        denom_corr = jnp.sum(acc_cnt)
    else:
        acc_to = results
        denom_corr = jnp.float32(0.0)

    loss_sum = -jnp.sum(acc_to)                            # sum of -targets*outputs
    denom = jnp.float32(N * HW) - denom_corr               # numel(loss[:,0,...]) - corr
    loss = loss_sum / denom
    return jnp.float32(temp) * loss


# --------------------------------------------------------------------------- #
# Pure-JAX reference (mirrors the PyTorch forward, weight=None path)
# --------------------------------------------------------------------------- #
def _reference(outputs, targets, targets_new, nco, temp=1):
    o = outputs.astype(jnp.float32)
    t = targets.astype(jnp.float32)
    denom_corr = jnp.float32(0.0)
    if targets_new is not None:
        drop = jnp.logical_and(targets_new != 255, targets_new >= nco)
        mask = jnp.where(drop, 0.0, 1.0).astype(jnp.float32)
        denom_corr = jnp.float32(mask.size) - jnp.sum(mask)
        t = t * mask[:, None, ...]
    loss = -t * o
    numel = outputs.shape[0] * int(math.prod(outputs.shape[2:]))
    return jnp.float32(temp) * (jnp.sum(loss) / (jnp.float32(numel) - denom_corr))


if __name__ == "__main__":
    key = jax.random.PRNGKey(0)
    k1, k2, k3, k4 = jax.random.split(key, 4)

    N, C, H, W = 2, 4, 16, 16
    nco, temp = 2, 1

    logits_student = jax.random.normal(k1, (N, C, H, W), dtype=jnp.float32)
    logits_teacher = jax.random.normal(k2, (N, C, H, W), dtype=jnp.float32)
    outputs = jax.nn.log_softmax(logits_student, axis=1)     # student log-probs
    targets = jax.nn.softmax(logits_teacher, axis=1)         # teacher soft targets

    labels = jax.random.randint(k3, (N, H, W), 0, C, dtype=jnp.int32)
    ignore = jax.random.bernoulli(k4, 0.2, (N, H, W))
    targets_new = jnp.where(ignore, jnp.int32(255), labels)

    # 1) masked variant; small lane tile (128) to exercise the multi-step grid pipeline.
    loss = kd_ce_loss_with_background(outputs, targets, targets_new=targets_new,
                                      nco=nco, temp=temp, max_lanes=128)
    jax.block_until_ready(loss)
    ref = _reference(outputs, targets, targets_new, nco, temp)
    assert jnp.allclose(loss, ref, rtol=1e-5, atol=1e-6), (loss, ref)

    # 2) targets_new=None variant with default tiling.
    loss2 = kd_ce_loss_with_background(outputs, targets, targets_new=None,
                                       nco=nco, temp=temp)
    jax.block_until_ready(loss2)
    ref2 = _reference(outputs, targets, None, nco, temp)
    assert jnp.allclose(loss2, ref2, rtol=1e-5, atol=1e-6), (loss2, ref2)

    print("KERNEL_OK")
</pallas_src>

<mosaic_0001>
module attributes {stable_mosaic.version = 11 : i64} {
  func.func @kernel(%arg0: i32, %arg1: i32, %arg2: memref<1x4x128xf32, #tpu.memory_space<vmem>>, %arg3: memref<1x4x128xf32, #tpu.memory_space<vmem>>, %arg4: memref<1x1x128xi32, #tpu.memory_space<vmem>>, %arg5: memref<1x4x128xf32, #tpu.memory_space<vmem>>, %arg6: memref<1x1x128xf32, #tpu.memory_space<vmem>>) attributes {dimension_semantics = [#tpu.dimension_semantics<parallel>, #tpu.dimension_semantics<arbitrary>], iteration_bounds = array<i64: 2, 2>, scalar_prefetch = 0 : i64, scratch_operands = 0 : i64, tpu.core_type = #tpu.core_type<tc>, window_params = [{transform_indices = @transform_0, window_bounds = array<i64: 1, 4, 128>}, {transform_indices = @transform_1, window_bounds = array<i64: 1, 4, 128>}, {transform_indices = @transform_2, window_bounds = array<i64: 1, 1, 128>}, {transform_indices = @transform_3, window_bounds = array<i64: 1, 4, 128>}, {transform_indices = @transform_4, window_bounds = array<i64: 1, 1, 128>}]} {
    %c0_i32 = arith.constant 0 : i32
    %0 = arith.cmpi eq, %arg1, %c0_i32 : i32
    %1 = arith.extui %0 : i1 to i32
    %c0_i32_0 = arith.constant 0 : i32
    %2 = arith.cmpi ne, %1, %c0_i32_0 : i32
    scf.if %2 {
      %cst_23 = arith.constant 0.000000e+00 : f32
      %25 = vector.broadcast %cst_23 : f32 to vector<1x4x128xf32>
      %c0_24 = arith.constant 0 : index
      %c0_25 = arith.constant 0 : index
      %c0_26 = arith.constant 0 : index
      %26 = vector.load %arg5[%c0_24, %c0_25, %c0_26] : memref<1x4x128xf32, #tpu.memory_space<vmem>>, vector<1x4x128xf32>
      tpu.vector_store %arg5[%c0_24, %c0_25, %c0_26], %25 {strides = array<i32>} : memref<1x4x128xf32, #tpu.memory_space<vmem>>, vector<1x4x128xf32>,
      %cst_27 = arith.constant 0.000000e+00 : f32
      %27 = vector.broadcast %cst_27 : f32 to vector<1x1x128xf32>
      %c0_28 = arith.constant 0 : index
      %c0_29 = arith.constant 0 : index
      %c0_30 = arith.constant 0 : index
      %28 = vector.load %arg6[%c0_28, %c0_29, %c0_30] : memref<1x1x128xf32, #tpu.memory_space<vmem>>, vector<1x1x128xf32>
      tpu.vector_store %arg6[%c0_28, %c0_29, %c0_30], %27 {strides = array<i32>} : memref<1x1x128xf32, #tpu.memory_space<vmem>>, vector<1x1x128xf32>,
    } else {
    }
    %c0 = arith.constant 0 : index
    %c0_1 = arith.constant 0 : index
    %c0_2 = arith.constant 0 : index
    %3 = vector.load %arg2[%c0, %c0_1, %c0_2] : memref<1x4x128xf32, #tpu.memory_space<vmem>>, vector<1x4x128xf32>
    %c0_3 = arith.constant 0 : index
    %c0_4 = arith.constant 0 : index
    %c0_5 = arith.constant 0 : index
    %4 = vector.load %arg3[%c0_3, %c0_4, %c0_5] : memref<1x4x128xf32, #tpu.memory_space<vmem>>, vector<1x4x128xf32>
    %c0_6 = arith.constant 0 : index
    %c0_7 = arith.constant 0 : index
    %c0_8 = arith.constant 0 : index
    %5 = vector.load %arg4[%c0_6, %c0_7, %c0_8] : memref<1x1x128xi32, #tpu.memory_space<vmem>>, vector<1x1x128xi32>
    %c255_i32 = arith.constant 255 : i32
    %6 = vector.broadcast %c255_i32 : i32 to vector<1x1x128xi32>
    %7 = arith.cmpi ne, %5, %6 : vector<1x1x128xi32>
    %c2_i32 = arith.constant 2 : i32
    %8 = vector.broadcast %c2_i32 : i32 to vector<1x1x128xi32>
    %9 = arith.cmpi sge, %5, %8 : vector<1x1x128xi32>
    %10 = arith.andi %7, %9 : vector<1x1x128xi1>
    %cst = arith.constant 0.000000e+00 : f32
    %cst_9 = arith.constant 1.000000e+00 : f32
    %11 = vector.broadcast %cst : f32 to vector<1x1x128xf32>
    %12 = vector.broadcast %cst_9 : f32 to vector<1x1x128xf32>
    %13 = arith.select %10, %11, %12 : vector<1x1x128xi1>, vector<1x1x128xf32>
    %c0_10 = arith.constant 0 : index
    %c0_11 = arith.constant 0 : index
    %c0_12 = arith.constant 0 : index
    %14 = vector.load %arg5[%c0_10, %c0_11, %c0_12] : memref<1x4x128xf32, #tpu.memory_space<vmem>>, vector<1x4x128xf32>
    %15 = vector.broadcast %13 : vector<1x1x128xf32> to vector<1x4x128xf32>
    %16 = arith.mulf %4, %15 : vector<1x4x128xf32>
    %17 = arith.mulf %16, %3 : vector<1x4x128xf32>
    %18 = arith.addf %14, %17 : vector<1x4x128xf32>
    %c0_13 = arith.constant 0 : index
    %c0_14 = arith.constant 0 : index
    %c0_15 = arith.constant 0 : index
    %19 = vector.load %arg5[%c0_13, %c0_14, %c0_15] : memref<1x4x128xf32, #tpu.memory_space<vmem>>, vector<1x4x128xf32>
    tpu.vector_store %arg5[%c0_13, %c0_14, %c0_15], %18 {strides = array<i32>} : memref<1x4x128xf32, #tpu.memory_space<vmem>>, vector<1x4x128xf32>,
    %c0_16 = arith.constant 0 : index
    %c0_17 = arith.constant 0 : index
    %c0_18 = arith.constant 0 : index
    %20 = vector.load %arg6[%c0_16, %c0_17, %c0_18] : memref<1x1x128xf32, #tpu.memory_space<vmem>>, vector<1x1x128xf32>
    %cst_19 = arith.constant 1.000000e+00 : f32
    %21 = vector.broadcast %cst_19 : f32 to vector<1x1x128xf32>
    %22 = arith.subf %21, %13 : vector<1x1x128xf32>
    %23 = arith.addf %20, %22 : vector<1x1x128xf32>
    %c0_20 = arith.constant 0 : index
    %c0_21 = arith.constant 0 : index
    %c0_22 = arith.constant 0 : index
    %24 = vector.load %arg6[%c0_20, %c0_21, %c0_22] : memref<1x1x128xf32, #tpu.memory_space<vmem>>, vector<1x1x128xf32>
    tpu.vector_store %arg6[%c0_20, %c0_21, %c0_22], %23 {strides = array<i32>} : memref<1x1x128xf32, #tpu.memory_space<vmem>>, vector<1x1x128xf32>,
    return
  }
  func.func @transform_0(%arg0: i32, %arg1: i32) -> (i32, i32, i32) {
    %c0_i32 = arith.constant 0 : i32
    %c0_i32_0 = arith.constant 0 : i32
    return %arg0, %c0_i32, %arg1 : i32, i32, i32
  }
  func.func @transform_1(%arg0: i32, %arg1: i32) -> (i32, i32, i32) {
    %c0_i32 = arith.constant 0 : i32
    %c0_i32_0 = arith.constant 0 : i32
    return %arg0, %c0_i32, %arg1 : i32, i32, i32
  }
  func.func @transform_2(%arg0: i32, %arg1: i32) -> (i32, i32, i32) {
    %c0_i32 = arith.constant 0 : i32
    %c0_i32_0 = arith.constant 0 : i32
    return %arg0, %c0_i32, %arg1 : i32, i32, i32
  }
  func.func @transform_3(%arg0: i32, %arg1: i32) -> (i32, i32, i32) {
    %c0_i32 = arith.constant 0 : i32
    %c0_i32_0 = arith.constant 0 : i32
    %c0_i32_1 = arith.constant 0 : i32
    return %arg0, %c0_i32, %c0_i32_0 : i32, i32, i32
  }
  func.func @transform_4(%arg0: i32, %arg1: i32) -> (i32, i32, i32) {
    %c0_i32 = arith.constant 0 : i32
    %c0_i32_0 = arith.constant 0 : i32
    %c0_i32_1 = arith.constant 0 : i32
    return %arg0, %c0_i32, %c0_i32_0 : i32, i32, i32
  }
}

</mosaic_0001>

<bundles_post_ra>
// kernel: tpu_custom_call.1
= control target key start
LH: loop header
LB: loop body
LE: loop exit
PB: predicated region body
PF: predicated region fallthrough
CT: control target
= control target key end

     0   :  { %s1222_s0 = inlined_call_operand.hbm [shape: f32[2,4,256], index: 0, kind: input, shape index: {}]   ;;  %s1223_s1 = inlined_call_operand.hbm [shape: f32[2,4,256], index: 1, kind: input, shape index: {}]   ;;  %s1224_s2 = inlined_call_operand.hbm [shape: s32[2,1,256], index: 2, kind: input, shape index: {}]   ;;  %s1225_s3 = inlined_call_operand.hbm [shape: f32[2,4,128], index: 3, kind: output, shape index: {0}]   ;;  %s1226_s4 = inlined_call_operand.hbm [shape: f32[2,1,128], index: 4, kind: output, shape index: {1}]  }
   0x1   :  { %1234 = sst [smem:[#allocation24_spill]] %s1223_s1 }
   0x2   :  { %10 = vsyncpa [#allocation3], 0 }
   0x3   :  { %12 = vsyncpa [#allocation3 + $0x1], 0 }
   0x4   :  { %13 = vsyncpa [#allocation6], 0 }
   0x5   :  { %15 = vsyncpa [#allocation6 + $0x1], 0 }
   0x6   :  { %16 = vsyncpa [#allocation4], 0 }
   0x7   :  { %18 = vsyncpa [#allocation4 + $0x1], 0 }
   0x8   :  { %19 = vsyncpa [#allocation10], 0 }
   0x9   :  { %21 = vsyncpa [#allocation10 + $0x1], 0  ;;  %s942_s15 = smov 0   ;;  %s944_s16 = smov 0  }
   0xa   :  { %s946_s17 = smov 0   ;;  %s948_s18 = smov 0  }
   0xb   :  { %s950_s19 = smov 0   ;;  %s952_s20 = smov 0  }
   0xc   :  { %s954_s21 = smov 0   ;;  %s956_s22 = smov 0  }
   0xd   :  { %s958_s23 = smov 0   ;;  %s960_s24 = smov 0  }
   0xe   :  { %s962_s25 = smov 0  }
   0xf LB: > { %1235 = sst [smem:[#allocation15_spill]] %s876_s17  ;;  %s996_s26 = sadd.s32 4294967295, %s908_s25   ;;  %s908_s25 = sphi %s962_s25, %s27_s25   ;;  %s904_s24 = sphi %s960_s24, %s1259_s24   ;;  %s900_s23 = sphi %s958_s23, %s1258_s23   ;;  %s896_s22 = sphi %s956_s22, %s1257_s22   ;;  %s892_s21 = sphi %s954_s21, %s1256_s21   ;;  %s888_s20 = sphi %s952_s20, %s1255_s20   ;;  %s884_s19 = sphi %s950_s19, %s1263_s19   ;;  %s880_s18 = sphi %s948_s18, %s1262_s18   ;;  %s876_s17 = sphi %s946_s17, %s1253_s17   ;;  %s872_s16 = sphi %s944_s16, %s1261_s16   ;;  %s868_s15 = sphi %s942_s15, %s1260_s15  }
  0x10   : > { %1236 = sst [smem:[#allocation16_spill]] %s888_s20  ;;  %s530_s27 = sadd.s32 4294967294, %s908_s25  }
  0x11   : > { %1237 = sst [smem:[#allocation17_spill]] %s900_s23  ;;  %s36_s28 = sadd.s32 1, %s900_s23 }
  0x12   : > { %1238 = sst [smem:[#allocation18_spill]] %s904_s24  ;;  %s39_s29 = sadd.s32 1, %s904_s24 }
  0x13   : > { %p37_p0 = scmp.ge.s32.totalorder %s36_s28, 2  ;;  %s48_s30 = sadd.s32 1, %s888_s20 }
  0x14   : > { %p55_p1 = scmp.ne.s32.totalorder %s888_s20, %s884_s19  ;;  %p56_p2 = scmp.eq.s32.totalorder %s908_s25, 0 }
  0x15   : > { %s1265_s28 = smov (%p37_p0, %s36_s28), 0  ;;  %s1267_s29 = smov (!%p37_p0, %s39_s29), %s904_s24 }
  0x16   : > { %1239 = sst [smem:[#allocation19_spill]] %s1265_s28  ;;  %s44_s5 = ssub.s32 %s900_s23, %s1265_s28 }
  0x17   : > { %p1010_p3 = por %p56_p2, %p55_p1  ;;  %p41_p4 = scmp.ge.s32.totalorder %s1267_s29, 2 }
  0x18   : > { %p61_p5 = scmp.ne.s32.totalorder %s884_s19, %s880_s18  ;;  %p62_p6 = scmp.eq.s32.totalorder %s996_s26, 0 }
  0x19   : > { %s130_s7 = sadd.s32 1, %s876_s17  ;;  %s1269_s29 = smov (%p41_p4, %s1267_s29), 0 }
  0x1a   : > { %1241 = sst [smem:[#allocation20_spill]] %s1269_s29  ;;  %p1019_p7 = por %p62_p6, %p61_p5 }
  0x1b   : > { %p140_p8 = scmp.ne.s32.totalorder %s876_s17, %s872_s16  ;;  %s43_s9 = ssub.s32 %s904_s24, %s1269_s29 }
  0x1c   : > { %p141_p9 = scmp.eq.s32.totalorder %s996_s26, 3  ;;  %s45_s10 = sor.u32 %s44_s5, %s43_s9 }
  0x1d   : > { %p128_p10 = scmp.eq.s32.totalorder %s43_s9, 0  ;;  %p46_p11 = scmp.eq.s32.totalorder %s45_s10, 0 }
  0x1e   : > { %p1028_p12 = por %p141_p9, %p140_p8  ;;  %p146_p13 = scmp.ne.s32.totalorder %s872_s16, %s868_s15 }
  0x1f   : > { %s1033_s12 = scalar_select %p128_p10, %s876_s17, %s130_s7  }
  0x20   : > { %s1036_s13 = scalar_select %p46_p11, %s888_s20, %s48_s30  }
  0x21   : > { %1244 = sst [smem:[#allocation21_spill]] %s1033_s12  ;;  %p147_p0 = scmp.eq.s32.totalorder %s530_s27, 3 }
  0x22   : > { %1245 = sst [smem:[#allocation22_spill]] %s1036_s13  ;;  %p578_p1 = scmp.lt.s32.totalorder %s908_s25, 4 }
  0x23   : > { %p1041_p2 = por %p147_p0, %p146_p13  ;;  %s1046_s18 = sand.u32 1, %s888_s20  }
  0x24   : > { %s533_s5 = sshll.u32 %s1046_s18, 2  ;;  %s534_s9 = sshll.u32 %s904_s24, 1 }
  0x25   : > { %s1246_s14 = scalar_select %p1041_p2, 1, 0 }
  0x26   : > { %s1051_s10 = sadd.s32 %s900_s23, %s534_s9  ;;  %p1055_p4 = pnand %p578_p1, %p1010_p3 }
  0x27   : > { %1247 = sst [smem:[#allocation23_spill]] %s1246_s14  ;;  %s535_s27 = sshll.u32 %s1051_s10, 6 }
  0x28   : > { %s213_s7 = sand.u32 1, %s908_s25   ;;  %s1249_s1 = sld [smem:[#allocation24_spill]] }
  0x29   : > { %s217_s20 = scalar_lea.vmem [#allocation5], %s533_s5  ;;  %p541_p5 = scmp.ge.s32.totalorder %s908_s25, 1 }
  0x2a   : > { %s226_s12 = sshll.u32 %s217_s20, 4  ;;  %p250_p6 = scmp.lt.s32.totalorder %s908_s25, 5  ;;  %s227_s12 = int_to_ptr.vmem [resolvable:$true] %s226_s12 }
  0x2b   : > { %s1068_s6 = scalar_lea.sflag [#allocation6], %s213_s7  ;;  %p672_p3 = pneg %p1055_p4 }
  0x2c   : > { %s683_s9 = scalar_lea.vmem %s227_s12, 64  ;;  %s910_s24 = smov [#allocation5]  }
  0x2d   : > { %p684_p8 = scmp.ne.s32.totalorder %s227_s12, %s683_s9  ;;  %s688_s23 = sshll.u32 %s910_s24, 4  ;;  %s689_s23 = int_to_ptr.vmem [resolvable:$false] %s688_s23 }
  0x2e   : > { %s224_s13 = scalar_lea.hbm %s1249_s1, %s535_s27  ;;  %s690_s28 = scalar_lea.vmem %s689_s23, 128 }
  0x2f   : > { %p686_p9 = pnand %p684_p8, %p672_p3  ;;  %p691_p11 = scmp.lt.s32.totalorder %s227_s12, %s689_s23 }
  0x30   : > { %p692_p13 = scmp.lt.s32.totalorder %s690_s28, %s683_s9 }
  0x31   : > { %p687_p10 = pneg %p686_p9 }
  0x32   : > { %p693_p0 = por %p692_p13, %p691_p11 }
  0x34   : > { %p694_p1 = pnand %p693_p0, %p687_p10 }
  0x36   : > { %697 = shalt.err (!%p694_p1)
}
  0x37   : > { %567 = dma.hbm_to_vmem [thread:$0]  (!%p1055_p4), %s224_s13, 64, %s227_s12, %s1068_s6  }
  0x38   : > { %p1082_p8 = pnand %p541_p5, %p250_p6  ;;  %s204_s29 = scalar_lea.hbm %s1222_s0, %s535_s27 }
  0x39   : > { %s197_s7 = scalar_lea.vmem [#allocation2], %s533_s5  ;;  %s540_s28 = sshll.u32 %s1051_s10, 4 }
  0x3a   : > { %s206_s9 = sshll.u32 %s197_s7, 4  ;;  %s194_s1 = scalar_lea.sflag [#allocation3], %s1046_s18  ;;  %s207_s9 = int_to_ptr.vmem [resolvable:$true] %s206_s9 }
  0x3b   : > { %s711_s17 = scalar_lea.vmem %s207_s9, 64  ;;  %s911_s12 = smov [#allocation2]  }
  0x3c   : > { %p712_p9 = scmp.ne.s32.totalorder %s207_s9, %s711_s17  ;;  %s716_s13 = sshll.u32 %s911_s12, 4  ;;  %s717_s13 = int_to_ptr.vmem [resolvable:$false] %s716_s13 }
  0x3d   : > { %s718_s14 = scalar_lea.vmem %s717_s13, 128  ;;  %p719_p5 = scmp.lt.s32.totalorder %s207_s9, %s717_s13 }
  0x3e   : > { %p714_p10 = pnand %p712_p9, %p672_p3  ;;  %p720_p6 = scmp.lt.s32.totalorder %s718_s14, %s711_s17 }
  0x40   : > { %p715_p11 = pneg %p714_p10  ;;  %p721_p13 = por %p720_p6, %p719_p5 }
  0x42   : > { %p722_p0 = pnand %p721_p13, %p715_p11 }
  0x44   : > { %725 = shalt.err (!%p722_p0)
}
  0x45   : > { %564 = dma.hbm_to_vmem [thread:$0]  (!%p1055_p4), %s204_s29, 64, %s207_s9, %s194_s1  }
  0x46   : > { %s243_s27 = scalar_lea.hbm %s1224_s2, %s540_s28  ;;  %s236_s23 = scalar_lea.vmem [#allocation7], %s1046_s18 }
  0x47   : > { %s245_s24 = sshll.u32 %s236_s23, 4  ;;  %s912_s17 = smov [#allocation7]   ;;  %s246_s24 = int_to_ptr.vmem [resolvable:$true] %s245_s24 }
  0x48   : > { %s739_s7 = scalar_lea.vmem %s246_s24, 16  ;;  %s744_s14 = sshll.u32 %s912_s17, 4  ;;  %s745_s14 = int_to_ptr.vmem [resolvable:$false] %s744_s14 }
  0x49   : > { %p740_p1 = scmp.ne.s32.totalorder %s246_s24, %s739_s7  ;;  %s746_s12 = scalar_lea.vmem %s745_s14, 32 }
  0x4a   : > { %p747_p11 = scmp.lt.s32.totalorder %s246_s24, %s745_s14  ;;  %p748_p5 = scmp.lt.s32.totalorder %s746_s12, %s739_s7 }
  0x4b   : > { %p742_p9 = pnand %p740_p1, %p672_p3 }
  0x4c   : > { %p749_p6 = por %p748_p5, %p747_p11 }
  0x4d   : > { %p743_p10 = pneg %p742_p9 }
  0x4f   : > { %p750_p13 = pnand %p749_p6, %p743_p10 }
  0x51   : > { %753 = shalt.err (!%p750_p13)
}
  0x52   : > { %570 = dma.hbm_to_vmem [thread:$0]  (!%p1055_p4), %s243_s27, 16, %s246_s24, %s1068_s6  }
  0x53   : > { %254 = sbr.rel (%p1082_p8) target bundleno = 150 (0x96), region = 32  ;;  %s256_s1 = sand.u32 (!%p1082_p8), 1, %s884_s19  }
  0x54   : > { %s542_s18 = sshll.u32 (!%p1082_p8), %s256_s1, 2  ;;  %s257_s29 = scalar_lea.sflag (!%p1082_p8), [#allocation3], %s256_s1 }
  0x55   : > { %s1111_s9 = scalar_lea.vmem (!%p1082_p8), [#allocation2], %s542_s18 }
  0x58   : > { %851 = dma.done.wait (%p1019_p7), %s257_s29, 64  }
  0x59   : > { %853 = vsyncadd (%p1019_p7), %s257_s29, 4294967232  ;;  %s265_s30 = sand.u32 1, %s996_s26   ;;  %s269_s6 = scalar_lea.vmem [#allocation5], %s542_s18 }
  0x5a   : > { %s266_s28 = scalar_lea.sflag [#allocation6], %s265_s30 }
  0x5b   : > { %855 = dma.done.wait (%p1019_p7), %s266_s28, 80  }
  0x5c   : > { %857 = vsyncadd (%p1019_p7), %s266_s28, 4294967216  ;;  %s1123_s20 = sand.u32 1, %s872_s16   ;;  %s277_s5 = scalar_lea.vmem [#allocation7], %s256_s1 }
  0x5d   : > { %s544_s13 = sshll.u32 %s1123_s20, 2  ;;  %s314_s27 = scalar_lea.vmem [#allocation9], %s1123_s20 }
  0x5e   : > { %s1126_s10 = scalar_lea.vmem [#allocation8], %s544_s13  ;;  %p545_p4 = scmp.ne.s32.totalorder %s892_s21, 0 }
  0x60   : > { %318 = sbr.rel (%p545_p4) target bundleno = 103 (0x67), region = 48 }
  0x65   : > { %v913_v0 = vmov 0.0  }
  0x66   : > { %319 = vst [vmem:[%s1126_s10] sm:$0xf] %v913_v0  ;;  %320 = vst [vmem:[%s314_s27] sm:$0x1] %v913_v0 }
  0x67 PF: > { %v323_v1 = vld [vmem:[%s277_s5] sm:$0x1]  ;;  %v330_v2 = vlaneseq  ;;  %v914_v4 = vmov 1.0   ;;  %s548_s21 = sshll.u32 %s896_s22, 4  ;;  %v322_v9 = vld [vmem:[%s269_s6] sm:$0xf] }
  0x68   : > { %vm324_vm0 = vcmp.ne.s32.totalorder %v323_v1, 255  ;;  %vm325_vm1 = vcmp.ge.s32.totalorder %v323_v1, 2  ;;  %s374_s26 = sshll.u32 %s314_s27, 4  ;;  %s1135_s24 = scalar_lea.hbm %s1226_s4, %s548_s21  ;;  %v321_v12 = vld [vmem:[%s1111_s9] sm:$0xf]  ;;  %s1137_s26 = int_to_ptr.vmem [resolvable:$true] %s374_s26 }
  0x69   : > { %vm326_vm2 = vmand %vm324_vm0, %vm325_vm1  ;;  %v331_v3 = vshrl.u32 %v330_v2, 7  ;;  %s547_s7 = sshll.u32 %s896_s22, 6  ;;  %s361_s17 = sshll.u32 %s1126_s10, 4  ;;  %s362_s17 = int_to_ptr.vmem [resolvable:$true] %s361_s17 }
  0x6a   : > { %v327_v5 = vsel %vm326_vm2, 0.0, %v914_v4  ;;  %s349_s14 = scalar_lea.sflag [#allocation10], %s1123_s20  ;;  %s754_s12 = scalar_lea.vmem %s1137_s26, 16 }
  0x6b   : > { %v332_v7 = vsub.s32 0, %v331_v3  ;;  %v340_v8 = vsub.f32 1.0, %v327_v5  ;;  %p755_p7 = scmp.ne.s32.totalorder %s1137_s26, %s754_s12  ;;  %s915_s1 = smov [#allocation9]  }
  0x6c   : > { %s758_s18 = sshll.u32 %s915_s1, 4  ;;  %s759_s18 = int_to_ptr.vmem [resolvable:$false] %s758_s18 }
  0x6d   : > { %v339_v6 = vld [vmem:[%s314_s27] sm:$0x1]  ;;  %v333_v10 = vrot.slane %v327_v5, %v332_v7  ;;  %v328_v14 = vld [vmem:[%s1126_s10] sm:$0xf]  ;;  %p756_p3 = pnand %p755_p7, %p1028_p12  ;;  %s760_s29 = scalar_lea.vmem %s759_s18, 32 }
  0x6e   : > { %v341_v11 = vadd.f32 %v340_v8, %v339_v6  ;;  %p761_p0 = scmp.lt.s32.totalorder %s1137_s26, %s759_s18  ;;  %p762_p1 = scmp.lt.s32.totalorder %s760_s29, %s754_s12 }
  0x6f   : > { %v335_v13 = vmul.f32 %v333_v10, %v322_v9  ;;  %p757_p8 = pneg %p756_p3 }
  0x70   : > { %342 = vst [vmem:[%s314_s27] sm:$0x1] %v341_v11  ;;  %p763_p9 = por %p762_p1, %p761_p0 }
  0x72   : > { %p764_p10 = pnand %p763_p9, %p757_p8 }
  0x74   : > { %767 = shalt.err (!%p764_p10)
}
  0x75   : > { %s768_s9 = scalar_lea.hbm %s1135_s24, 16  ;;  %s772_s6 = scalar_lea.hbm %s1226_s4, 32 }
  0x76   : > { %p769_p11 = scmp.ne.s32.totalorder %s1135_s24, %s768_s9  ;;  %p773_p13 = scmp.lt.s32.totalorder %s1135_s24, %s1226_s4 }
  0x77   : > { %p774_p4 = scmp.lt.s32.totalorder %s772_s6, %s768_s9 }
  0x78   : > { %p770_p5 = pnand %p769_p11, %p1028_p12 }
  0x79   : > { %p775_p7 = por %p774_p4, %p773_p13 }
  0x7a   : > { %p771_p6 = pneg %p770_p5 }
  0x7c   : > { %p776_p3 = pnand %p775_p7, %p771_p6 }
  0x7e   : > { %779 = shalt.err (!%p776_p3)
}
  0x7f   : > { %558 = dma.vmem_to_hbm [thread:$0]  (%p1028_p12), %s1137_s26, 16, %s1135_s24, %s349_s14   ;;  %v336_v15 = vmul.f32 %v335_v13, %v321_v12 }
  0x80   : > { %s359_s8 = scalar_lea.hbm %s1225_s3, %s547_s7  ;;  %s344_s23 = scalar_lea.sflag [#allocation4], %s1123_s20 }
  0x81   : > { %v337_v16 = vadd.f32 %v336_v15, %v328_v14  ;;  %s780_s12 = scalar_lea.vmem %s362_s17, 64  ;;  %s916_s1 = smov [#allocation8]  }
  0x82   : > { %p781_p8 = scmp.ne.s32.totalorder %s362_s17, %s780_s12  ;;  %s784_s18 = sshll.u32 %s916_s1, 4  ;;  %s785_s18 = int_to_ptr.vmem [resolvable:$false] %s784_s18 }
  0x83   : > { %338 = vst [vmem:[%s1126_s10] sm:$0xf] %v337_v16  ;;  %s786_s26 = scalar_lea.vmem %s785_s18, 128  ;;  %p787_p9 = scmp.lt.s32.totalorder %s362_s17, %s785_s18 }
  0x84   : > { %p782_p0 = pnand %p781_p8, %p1028_p12  ;;  %p788_p10 = scmp.lt.s32.totalorder %s786_s26, %s780_s12 }
  0x86   : > { %p783_p1 = pneg %p782_p0  ;;  %p789_p11 = por %p788_p10, %p787_p9 }
  0x88   : > { %p790_p5 = pnand %p789_p11, %p783_p1 }
  0x8a   : > { %793 = shalt.err (!%p790_p5)
}
  0x8b   : > { %s794_s22 = scalar_lea.hbm %s359_s8, 64  ;;  %s798_s24 = scalar_lea.hbm %s1225_s3, 128 }
  0x8c   : > { %p795_p6 = scmp.ne.s32.totalorder %s359_s8, %s794_s22  ;;  %p799_p7 = scmp.lt.s32.totalorder %s359_s8, %s1225_s3 }
  0x8d   : > { %p800_p3 = scmp.lt.s32.totalorder %s798_s24, %s794_s22 }
  0x8e   : > { %p796_p13 = pnand %p795_p6, %p1028_p12 }
  0x8f   : > { %p801_p8 = por %p800_p3, %p799_p7 }
  0x90   : > { %p797_p4 = pneg %p796_p13 }
  0x92   : > { %p802_p0 = pnand %p801_p8, %p797_p4 }
  0x94   : > { %805 = shalt.err (!%p802_p0)
}
  0x95   : > { %557 = dma.vmem_to_hbm [thread:$0]  (%p1028_p12), %s362_s17, 64, %s359_s8, %s344_s23  }
  0x96 PF: > { %p579_p1 = scmp.ge.s32.totalorder %s908_s25, 2  ;;  %s386_s9 = sand.u32 1, %s868_s15  }
  0x97   : > { %s387_s30 = scalar_lea.sflag [#allocation4], %s386_s9 }
  0x98   : > { %p572_p9 = pnand %p579_p1, %p1041_p2 }
  0x9a   : > { %p573_p10 = pneg %p572_p9 }
  0x9c   : > { %859 = dma.done.wait (%p573_p10), %s387_s30, 64  }
  0x9d   : > { %861 = vsyncadd (%p573_p10), %s387_s30, 4294967232  ;;  %s396_s28 = scalar_lea.sflag [#allocation10], %s386_s9 }
  0x9e   : > { %863 = dma.done.wait (%p573_p10), %s396_s28, 16  }
  0x9f   : > { %865 = vsyncadd (%p573_p10), %s396_s28, 4294967280  ;;  %s27_s25 = sadd.s32 1, %s908_s25   ;;  %s1252_s11 = sld [smem:[#allocation15_spill]] }
  0xa0   : > { %p24_p11 = scmp.ge.s32.totalorder %s27_s25, 6   ;;  %s1253_s17 = sld [smem:[#allocation21_spill]] }
  0xa1   : > { %s1254_s6 = sld [smem:[#allocation16_spill]]  ;;  %s1260_s15 = smov %s872_s16 }
  0xa2   : > { %s1255_s20 = sld [smem:[#allocation22_spill]]  ;;  %s1262_s18 = smov %s884_s19 }
  0xa3   : > { %s1256_s21 = sld [smem:[#allocation17_spill]]  ;;  %26 = sbr.rel (!%p24_p11) target bundleno = 15 (0xf), region = 122 }
  0xa4   : > { %s1257_s22 = sld [smem:[#allocation18_spill]] }
  0xa5   : > { %s1258_s23 = sld [smem:[#allocation19_spill]]  ;;  %s1261_s16 = smov %s1252_s11 }
  0xa6   : > { %s1259_s24 = sld [smem:[#allocation20_spill]] }
  0xa7   : > { %s1263_s19 = smov %s1254_s6 }
  0xa8   :  { %400 = vsyncpa [#allocation3], 1 }
  0xa9   :  { %402 = vsyncpa [#allocation3 + $0x1], 1 }
  0xaa   :  { %403 = vsyncpa [#allocation6], 1 }
  0xab   :  { %405 = vsyncpa [#allocation6 + $0x1], 1 }
  0xac   :  { %406 = vsyncpa [#allocation4], 1 }
  0xad   :  { %408 = vsyncpa [#allocation4 + $0x1], 1 }
  0xae   :  { %409 = vsyncpa [#allocation10], 1 }
  0xaf   :  { %411 = vsyncpa [#allocation10 + $0x1], 1 }

</bundles_post_ra>
